<compile_context>
chip_gen: v5e
topology: v5e:2x2
jax: 0.10.0
libtpu: 0.0.40
codegen_flags: <defaults>
</compile_context>

<pallas_src>
import jax
import jax.numpy as jnp
from jax.experimental import pallas as pl
from jax.experimental.pallas import tpu as pltpu


def _vmem_budget_bytes():
    """Generation-aware (block_footprint_budget, vmem_limit_bytes)."""
    try:
        cap = int(pltpu.get_tpu_info().vmem_capacity_bytes)
    except Exception:
        cap = 64 << 20  # conservative fallback (v7x per-TC VMEM)
    budget = min(cap // 2, 48 << 20)        # double-buffered block footprint
    limit = max(32 << 20, min(cap - (8 << 20), budget + (16 << 20)))
    return budget, limit


def _pick_tile(n_rows, lane_width, itemsize, half, vmem_budget, max_rows=16384):
    """Rows per grid step.

    Big enough to amortize the ~0.35 us per-step overhead against HBM time,
    small enough that the double-buffered x/out blocks, the lane-padded
    (tile,1)->(tile,128) f32 positions block and the f32 intermediates stay
    inside `vmem_budget`.
    """
    per_row = (
        4 * lane_width * itemsize   # x + out blocks, double-buffered
        + 2 * 128 * 4               # positions block (lane-padded), 2 buffers
        + 6 * half * 4              # f32 freqs/cos/sin + widened x halves
    )
    rows = int(vmem_budget // max(1, per_row))
    rows = max(16, min(max_rows, rows))
    rows -= rows % 16               # bf16 packs 16 sublanes per vreg
    if rows >= n_rows:
        # Single block covering everything: block dims == full array dims, so
        # no (8,128) divisibility requirement and no ragged block at all.
        return max(1, n_rows)
    return rows


def _make_rope_kernel(dim, n_head):
    half = dim // 2

    def kernel(x_ref, pos_ref, inv_ref, o_ref):
        # x_ref/o_ref: (tile, n_head*dim)  input dtype (e.g. bf16)
        # pos_ref:     (tile, 1)           f32 positions
        # inv_ref:     (1, half)           f32 inv_freq * distance_scale
        freqs = pos_ref[...] * inv_ref[...]           # (tile, half) f32
        c = jnp.cos(freqs)                            # f32, shared across heads
        s = jnp.sin(freqs)
        for h in range(n_head):                       # static unroll (small H)
            b = h * dim
            x1 = x_ref[:, b:b + half].astype(jnp.float32)
            x2 = x_ref[:, b + half:b + dim].astype(jnp.float32)
            # out[:half] = x1*cos - x2*sin ; out[half:] = x2*cos + x1*sin
            # (== x*cos(emb) + rotate_half(x)*sin(emb), without lane concats)
            o_ref[:, b:b + half] = (x1 * c - x2 * s).astype(o_ref.dtype)
            o_ref[:, b + half:b + dim] = (x2 * c + x1 * s).astype(o_ref.dtype)

    return kernel


def rotary_embedding(x, x_pos, inv_freq, *, distance_scale=1.0, tile=None,
                     max_fold_heads=32):
    """Pallas RoPE forward.

    x: (..., dim); x_pos broadcastable against x.shape[:-1]; inv_freq: (dim//2,).
    """
    orig_shape = x.shape
    dim = orig_shape[-1]
    assert dim % 2 == 0, "RoPE requires an even feature dim"
    half = dim // 2
    inv_freq = jnp.asarray(inv_freq)
    assert inv_freq.shape == (half,)

    lead = orig_shape[:-1]
    x_pos = jnp.asarray(x_pos)
    pshape = x_pos.shape
    assert len(pshape) <= len(lead), "x_pos must broadcast against x.shape[:-1]"

    # Fold trailing axes of x.shape[:-1] over which x_pos is broadcast
    # ("heads"), so cos/sin are computed once per position, not once per head.
    k, p = len(lead), len(pshape)
    n_fold = 0
    for ax in range(1, k + 1):
        pos_d = pshape[p - ax] if ax <= p else 1
        if pos_d == 1:
            n_fold += 1
        else:
            break
    n_head = 1
    for d in lead[k - n_fold:]:
        n_head *= int(d)
    if n_head > max_fold_heads:          # keep the in-kernel unroll bounded
        n_fold, n_head = 0, 1
    row_shape = lead[:k - n_fold]

    # Positions broadcast to the (unfolded) row shape, flattened to (N, 1) f32.
    pos_core = x_pos.reshape(pshape[:p - min(n_fold, p)])
    pos_rows = jnp.broadcast_to(pos_core, row_shape)

    n = 1
    for d in row_shape:
        n *= int(d)
    if n == 0:
        return x
    lane_w = n_head * dim

    x2 = x.reshape(n, lane_w)
    pos2 = pos_rows.reshape(n, 1).astype(jnp.float32)
    # Keep inv_freq in f32 and fold distance_scale in (pos*scale*inv ==
    # pos*(scale*inv)); jnp.asarray also accepts traced distance_scale values.
    scale = jnp.asarray(distance_scale, dtype=jnp.float32)
    inv2 = (inv_freq.astype(jnp.float32) * scale).reshape(1, half)

    budget, vmem_limit = _vmem_budget_bytes()
    if tile is None:
        tile = _pick_tile(n, lane_w, x2.dtype.itemsize, half, budget)
    grid = (pl.cdiv(n, tile),)

    out = pl.pallas_call(
        _make_rope_kernel(dim, n_head),
        out_shape=jax.ShapeDtypeStruct((n, lane_w), x.dtype),
        grid_spec=pltpu.PrefetchScalarGridSpec(
            num_scalar_prefetch=0,
            grid=grid,
            in_specs=[
                pl.BlockSpec((tile, lane_w), lambda i: (i, 0)),  # x rows
                pl.BlockSpec((tile, 1), lambda i: (i, 0)),       # positions
                pl.BlockSpec((1, half), lambda i: (0, 0)),       # inv_freq
            ],
            out_specs=pl.BlockSpec((tile, lane_w), lambda i: (i, 0)),
        ),
        compiler_params=pltpu.CompilerParams(
            # Rows are independent; "parallel" permits megacore sharding.
            # TODO(synk): evaluate pltpu.CORE_PARALLEL on v7x with a trace.
            dimension_semantics=("parallel",),
            vmem_limit_bytes=int(vmem_limit),
        ),
    )(x2, pos2, inv2)

    return out.reshape(orig_shape)


def make_inv_freq(dim, base=10000.0, dtype=jnp.float32):
    # Matches 1.0 / base ** (arange(0, dim, 2, float32) / dim).  The torch
    # module casts this to half; keeping it f32 avoids phase error growing
    # linearly with position (the wrapper uses f32 regardless).
    inv = 1.0 / (base ** (jnp.arange(0, dim, 2, dtype=jnp.float32) / dim))
    return inv.astype(dtype)


def rotary_embedding_ref(x, x_pos, inv_freq, distance_scale=1.0):
    """Pure-JAX reference mirroring the PyTorch forward (math in f32)."""
    pos = x_pos.astype(jnp.float32) * jnp.asarray(distance_scale, jnp.float32)
    freqs = pos[..., None] * inv_freq.astype(jnp.float32)
    emb = jnp.concatenate([freqs, freqs], axis=-1)
    half = x.shape[-1] // 2
    xf = x.astype(jnp.float32)
    rotate_x = jnp.concatenate([-xf[..., half:], xf[..., :half]], axis=-1)
    return (xf * jnp.cos(emb) + rotate_x * jnp.sin(emb)).astype(x.dtype)


if __name__ == "__main__":
    key = jax.random.PRNGKey(0)
    k1, k2 = jax.random.split(key)
    dtype = jnp.bfloat16  # TPU analogue of torch.half

    # Case 1: (B, S, D) with per-(B, S) positions; dim=128 keeps the output
    # lane-dense (dim % 128 == 0 -> unmasked dense stores).
    B, S, D = 2, 8, 128
    x1 = jax.random.normal(k1, (B, S, D), dtype=jnp.float32).astype(dtype)
    pos1 = jnp.broadcast_to(jnp.arange(S, dtype=jnp.float32)[None, :], (B, S))
    inv_freq = make_inv_freq(D)

    out1 = jax.block_until_ready(rotary_embedding(x1, pos1, inv_freq))
    ref1 = rotary_embedding_ref(x1, pos1, inv_freq)
    assert out1.shape == x1.shape and out1.dtype == x1.dtype
    assert jnp.allclose(out1.astype(jnp.float32), ref1.astype(jnp.float32),
                        atol=5e-2, rtol=5e-2), "case 1 mismatch"

    # Case 2: (B, S, H, D) with positions shared across heads (x_pos (B,S,1)),
    # a non-unit distance_scale, and a forced small tile so the ragged final
    # grid block (N=10 rows, tile=8) is exercised (no wrapper-side padding).
    B2, S2, H2, D2 = 2, 5, 3, 128
    x2 = jax.random.normal(k2, (B2, S2, H2, D2), dtype=jnp.float32).astype(dtype)
    pos2 = jnp.broadcast_to(
        jnp.arange(S2, dtype=jnp.float32)[None, :, None], (B2, S2, 1))
    out2 = jax.block_until_ready(
        rotary_embedding(x2, pos2, inv_freq, distance_scale=0.5, tile=8))
    ref2 = rotary_embedding_ref(x2, pos2, inv_freq, distance_scale=0.5)
    assert out2.shape == x2.shape and out2.dtype == x2.dtype
    assert jnp.allclose(out2.astype(jnp.float32), ref2.astype(jnp.float32),
                        atol=5e-2, rtol=5e-2), "case 2 mismatch"

    print("KERNEL_OK")
</pallas_src>

<mosaic_0001>
module attributes {stable_mosaic.version = 11 : i64} {
  func.func @kernel(%arg0: i32, %arg1: memref<16x128xbf16, #tpu.memory_space<vmem>>, %arg2: memref<16x1xf32, #tpu.memory_space<vmem>>, %arg3: memref<1x64xf32, #tpu.memory_space<vmem>>, %arg4: memref<16x128xbf16, #tpu.memory_space<vmem>>) attributes {dimension_semantics = [#tpu.dimension_semantics<parallel>], iteration_bounds = array<i64: 1>, scalar_prefetch = 0 : i64, scratch_operands = 0 : i64, tpu.core_type = #tpu.core_type<tc>, window_params = [{transform_indices = @transform_0, window_bounds = array<i64: 16, 128>}, {transform_indices = @transform_1, window_bounds = array<i64: 16, 1>}, {pipeline_mode = #tpu.pipeline_mode<synchronous>, transform_indices = @transform_2, window_bounds = array<i64: 1, 64>}, {transform_indices = @transform_3, window_bounds = array<i64: 16, 128>}]} {
    %c0 = arith.constant 0 : index
    %c0_0 = arith.constant 0 : index
    %0 = vector.load %arg2[%c0, %c0_0] : memref<16x1xf32, #tpu.memory_space<vmem>>, vector<16x1xf32>
    %c0_1 = arith.constant 0 : index
    %c0_2 = arith.constant 0 : index
    %1 = vector.load %arg3[%c0_1, %c0_2] : memref<1x64xf32, #tpu.memory_space<vmem>>, vector<1x64xf32>
    %2 = vector.broadcast %0 : vector<16x1xf32> to vector<16x64xf32>
    %3 = vector.broadcast %1 : vector<1x64xf32> to vector<16x64xf32>
    %4 = arith.mulf %2, %3 : vector<16x64xf32>
    %5 = math.cos %4 : vector<16x64xf32>
    %6 = math.sin %4 : vector<16x64xf32>
    %c0_3 = arith.constant 0 : index
    %c0_4 = arith.constant 0 : index
    %7 = vector.load %arg1[%c0_3, %c0_4] : memref<16x128xbf16, #tpu.memory_space<vmem>>, vector<16x64xbf16>
    %8 = arith.extf %7 : vector<16x64xbf16> to vector<16x64xf32>
    %c0_5 = arith.constant 0 : index
    %c64 = arith.constant 64 : index
    %9 = vector.load %arg1[%c0_5, %c64] : memref<16x128xbf16, #tpu.memory_space<vmem>>, vector<16x64xbf16>
    %10 = arith.extf %9 : vector<16x64xbf16> to vector<16x64xf32>
    %11 = arith.mulf %8, %5 : vector<16x64xf32>
    %12 = arith.mulf %10, %6 : vector<16x64xf32>
    %13 = arith.subf %11, %12 : vector<16x64xf32>
    %14 = arith.truncf %13 : vector<16x64xf32> to vector<16x64xbf16>
    %c0_6 = arith.constant 0 : index
    %c0_7 = arith.constant 0 : index
    %15 = vector.load %arg4[%c0_6, %c0_7] : memref<16x128xbf16, #tpu.memory_space<vmem>>, vector<16x64xbf16>
    tpu.vector_store %arg4[%c0_6, %c0_7], %14 {strides = array<i32>} : memref<16x128xbf16, #tpu.memory_space<vmem>>, vector<16x64xbf16>,
    %16 = arith.mulf %10, %5 : vector<16x64xf32>
    %17 = arith.mulf %8, %6 : vector<16x64xf32>
    %18 = arith.addf %16, %17 : vector<16x64xf32>
    %19 = arith.truncf %18 : vector<16x64xf32> to vector<16x64xbf16>
    %c0_8 = arith.constant 0 : index
    %c64_9 = arith.constant 64 : index
    %20 = vector.load %arg4[%c0_8, %c64_9] : memref<16x128xbf16, #tpu.memory_space<vmem>>, vector<16x64xbf16>
    tpu.vector_store %arg4[%c0_8, %c64_9], %19 {strides = array<i32>} : memref<16x128xbf16, #tpu.memory_space<vmem>>, vector<16x64xbf16>,
    return
  }
  func.func @transform_0(%arg0: i32) -> (i32, i32) {
    %c0_i32 = arith.constant 0 : i32
    %c0_i32_0 = arith.constant 0 : i32
    return %arg0, %c0_i32 : i32, i32
  }
  func.func @transform_1(%arg0: i32) -> (i32, i32) {
    %c0_i32 = arith.constant 0 : i32
    %c0_i32_0 = arith.constant 0 : i32
    return %arg0, %c0_i32 : i32, i32
  }
  func.func @transform_2(%arg0: i32) -> (i32, i32) {
    %c0_i32 = arith.constant 0 : i32
    %c0_i32_0 = arith.constant 0 : i32
    %c0_i32_1 = arith.constant 0 : i32
    return %c0_i32, %c0_i32_0 : i32, i32
  }
  func.func @transform_3(%arg0: i32) -> (i32, i32) {
    %c0_i32 = arith.constant 0 : i32
    %c0_i32_0 = arith.constant 0 : i32
    return %arg0, %c0_i32 : i32, i32
  }
}

</mosaic_0001>

<bundles_post_ra>
// kernel: tpu_custom_call.1
= control target key start
LH: loop header
LB: loop body
LE: loop exit
PB: predicated region body
PF: predicated region fallthrough
CT: control target
= control target key end

     0   :  { %v781_v1 = vmov 0   ;;  %s1002_s0 = inlined_call_operand.vmem [shape: bf16[16,128], index: 0, kind: input, shape index: {}]   ;;  %s1003_s1 = inlined_call_operand.vmem [shape: f32[16,1], index: 1, kind: input, shape index: {}]   ;;  %s1004_s2 = inlined_call_operand.vmem [shape: f32[1,64], index: 2, kind: input, shape index: {}]   ;;  %s1005_s3 = inlined_call_operand.hbm [shape: bf16[16,128], index: 3, kind: output, shape index: {}]  }
   0x1   :  { %v15_v0 = vld [vmem:[%s1003_s1] sm:$0xff]  ;;  %753 = vset.pattern.permute.xlu0 %v781_v1 }
   0x2   :  { %20 = vperm.xlu0 %753, %v15_v0  }
   0x3   :  { %8 = vsyncpa [#allocation3], 0  ;;  %v16_v2 = vld [vmem:[%s1003_s1 + $0x8] sm:$0xff]  ;;  %v754_v3 = vld [vmem:[%s1004_s2] ss:$0 sm:$0xff]  ;;  %s788_s1 = smov 64  }
   0x4   :  { %v782_v21 = vmov 2102212464   ;;  %v783_v25 = vmov 920167782   ;;  %v784_v28 = vmov 1326507024  }
   0x5   :  { %v785_v30 = vmov 2475754826   ;;  %v786_v35 = vmov 683565275   ;;  %v787_v39 = vmov 2131351028  }
   0x6   :  { %s715_s22 = sshll.u32 %s1005_s3, 4  ;;  %s790_s23 = smov 4   ;;  %s716_s22 = int_to_ptr.hbm [resolvable:$true] %s715_s22 }
   0xa   :  { %25 = vperm.xlu0 %753, %v16_v2  }
  0x74   :  { %v21_v4 = vpop.permute.xlu0 %20 }
  0x75   :  { %v821_v5 = vmul.f32 %v754_v3, %v21_v4 }
  0x77   :  { %v36_v6 = vand.u32 2139095040, %v821_v5  ;;  %v33_v10 = vand.u32 2147483647, %v821_v5 }
  0x79   :  { %v37_v7 = vshrl.u32 %v36_v6, 23  ;;  %v40_v16 = vand.u32 8388607, %v33_v10 }
  0x7b   :  { %v727_v8 = vadd.s32 4294967169, %v37_v7  ;;  %v41_v24 = vor.u32 8388608, %v40_v16 }
  0x7c   :  { %v26_v9 = vpop.permute.xlu0 %25 }
  0x7d   :  { %v43_v11 = vadd.s32 1, %v727_v8  ;;  %v825_v12 = vmul.f32 %v754_v3, %v26_v9  ;;  %v836_v42 = vshll.u32 %v41_v24, 8 }
  0x7f   :  { %vm44_vm0 = vcmp.gt.s32.totalorder %v43_v11, 0  ;;  %v187_v13 = vand.u32 2147483647, %v825_v12  ;;  %v190_v14 = vand.u32 2139095040, %v825_v12 }
  0x80   :  { %v45_v15 = vsel %vm44_vm0, %v43_v11, 0 }
  0x81   :  { %v47_v17 = vand.u32 31, %v45_v15  ;;  %v191_v18 = vshrl.u32 %v190_v14, 23  ;;  %v194_v19 = vand.u32 8388607, %v187_v13  ;;  %v833_v32 = vshrl.u32 %v45_v15, 5 }
  0x83   :  { %v48_v20 = vsub.s32 32, %v47_v17  ;;  %v59_v22 = vshll.u32 %v782_v21, %v47_v17  ;;  %v730_v23 = vadd.s32 4294967169, %v191_v18  ;;  %v62_v27 = vshll.u32 %v783_v25, %v47_v17 }
  0x84   :  { %v195_v33 = vor.u32 8388608, %v194_v19  ;;  %v50_v36 = vshll.u32 %v786_v35, %v47_v17  ;;  %v53_v45 = vshll.u32 %v785_v30, %v47_v17  ;;  %v56_v46 = vshll.u32 %v787_v39, %v47_v17 }
  0x85   :  { %v60_v26 = vshrl.u32 %v783_v25, %v48_v20  ;;  %v63_v29 = vshrl.u32 %v784_v28, %v48_v20  ;;  %v51_v31 = vshrl.u32 %v785_v30, %v48_v20  ;;  %v197_v34 = vadd.s32 1, %v730_v23 }
  0x86   :  { %v54_v40 = vshrl.u32 %v787_v39, %v48_v20  ;;  %v57_v41 = vshrl.u32 %v782_v21, %v48_v20  ;;  %vm68_vm2 = vcmp.lt.s32.totalorder %v833_v32, 4  ;;  %v839_v48 = vshll.u32 %v195_v33, 8 }
  0x87   :  { %v61_v37 = vor.u32 %v60_v26, %v59_v22  ;;  %v64_v38 = vor.u32 %v63_v29, %v62_v27  ;;  %vm198_vm1 = vcmp.gt.s32.totalorder %v197_v34, 0  ;;  %v52_v44 = vor.u32 %v51_v31, %v50_v36 }
  0x88   :  { %v199_v43 = vsel %vm198_vm1, %v197_v34, 0  ;;  %v49_v49 = vshrl.u32 %v786_v35, %v48_v20  ;;  %v55_v52 = vor.u32 %v54_v40, %v53_v45  ;;  %v58_v53 = vor.u32 %v57_v41, %v56_v46 }
  0x89   :  { %v201_v47 = vand.u32 31, %v199_v43  ;;  %v74_v50 = vsel %vm68_vm2, %v61_v37, 920167782  ;;  %v78_v51 = vsel %vm68_vm2, %v64_v38, 1326507024  ;;  %v846_v54 = vshrl.u32 %v199_v43, 5 }
  0x8a   :  { %vm65_vm3 = vcmp.lt.s32.totalorder %v833_v32, 1  ;;  %vm66_vm4 = vcmp.lt.s32.totalorder %v833_v32, 2  ;;  %vm67_vm5 = vcmp.lt.s32.totalorder %v833_v32, 3  ;;  %v70_v17 = vsel %vm68_vm2, %v58_v53, 2102212464 }
  0x8b   :  { %v848_v55 = vsub.s32 32, %v201_v47  ;;  %v204_v56 = vshll.u32 %v786_v35, %v201_v47  ;;  %v207_v57 = vshll.u32 %v785_v30, %v201_v47  ;;  %v69_v58 = vsel %vm65_vm3, %v49_v49, %v52_v44 }
  0x8c   :  { %v210_v61 = vshll.u32 %v787_v39, %v201_v47  ;;  %v213_v63 = vshll.u32 %v782_v21, %v201_v47  ;;  %v216_v2 = vshll.u32 %v783_v25, %v201_v47  ;;  %v73_v8 = vsel %vm65_vm3, %v52_v44, %v55_v52 }
  0x8d   :  { %v205_v59 = vshrl.u32 %v785_v30, %v848_v55  ;;  %v208_v60 = vshrl.u32 %v787_v39, %v848_v55  ;;  %v211_v62 = vshrl.u32 %v782_v21, %v848_v55  ;;  %v214_v0 = vshrl.u32 %v783_v25, %v848_v55 }
  0x8e   :  { %v217_v3 = vshrl.u32 %v784_v28, %v848_v55  ;;  %vm219_vm6 = vcmp.lt.s32.totalorder %v846_v54, 1  ;;  %v75_v14 = vsel %vm67_vm5, %v58_v53, %v74_v50  ;;  %vm222_vm7 = vcmp.lt.s32.totalorder %v846_v54, 4 }
  0x8f   :  { %v861_v4 = vor.u32 %v205_v59, %v204_v56  ;;  %v863_v6 = vor.u32 %v208_v60, %v207_v57  ;;  %v865_v7 = vor.u32 %v211_v62, %v210_v61  ;;  %v215_v9 = vor.u32 %v214_v0, %v213_v63 }
  0x90   :  { %v218_v11 = vor.u32 %v217_v3, %v216_v2  ;;  %vm220_vm8 = vcmp.lt.s32.totalorder %v846_v54, 2  ;;  %vm221_vm9 = vcmp.lt.s32.totalorder %v846_v54, 3  ;;  %v76_v22 = vsel %vm66_vm4, %v73_v8, %v75_v14 }
  0x91   :  { %v227_v15 = vsel %vm219_vm6, %v861_v4, %v863_v6  ;;  %v231_v16 = vsel %vm219_vm6, %v863_v6, %v865_v7  ;;  %v228_v18 = vsel %vm222_vm7, %v215_v9, 920167782  ;;  %v77_v23 = vsel %vm65_vm3, %v55_v52, %v58_v53 }
  0x92   :  { %v232_v19 = vsel %vm222_vm7, %v218_v11, 1326507024  ;;  %v229_v20 = vsel %vm221_vm9, %v865_v7, %v228_v18  ;;  %v71_v26 = vsel %vm67_vm5, %v55_v52, %v70_v17  ;;  %v79_v27 = vsel %vm67_vm5, %v61_v37, %v78_v51 }
  0x93   :  { %v233_v21 = vsel %vm221_vm9, %v215_v9, %v232_v19  ;;  %v230_v24 = vsel %vm220_vm8, %v227_v15, %v229_v20  ;;  %v236_v28 = vand.u32 65535, %v839_v48  ;;  %v82_v31 = vand.u32 65535, %v836_v42 }
  0x94   :  { %v234_v25 = vsel %vm220_vm8, %v231_v16, %v233_v21  ;;  %v261_v33 = vshrl.u32 %v230_v24, 16  ;;  %v80_v34 = vsel %vm66_vm4, %v77_v23, %v79_v27  ;;  %v106_v36 = vand.u32 65535, %v76_v22 }
  0x95   :  { %v238_v29 = vand.u32 65535, %v234_v25  ;;  %v239_v30 = vshrl.u32 %v234_v25, 16  ;;  %v107_v38 = vshrl.u32 %v76_v22, 16  ;;  %v237_v39 = vshrl.u32 %v839_v48, 16 }
  0x96   :  { %v915_v41 = vsel %vm66_vm4, %v69_v58, %v71_v26  ;;  %v83_v37 = vshrl.u32 %v836_v42, 16  ;;  %v260_v44 = vand.u32 65535, %v230_v24  ;;  %v84_v45 = vand.u32 65535, %v80_v34 }
  0x97   :  { %v911_v40 = vmul.u32 %v239_v30, %v236_v28  ;;  %v240_v43 = vmul.u32 %v238_v29, %v236_v28  ;;  %v85_v46 = vshrl.u32 %v80_v34, 16  ;;  %v243_v47 = vmul.u32 %v239_v30, %v237_v39 }
  0x98   :  { %v109_v50 = vmul.u32 %v107_v38, %v82_v31  ;;  %v110_v51 = vmul.u32 %v106_v36, %v83_v37  ;;  %v919_v52 = vmul.u32 %v261_v33, %v236_v28  ;;  %v265_v53 = vmul.u32 %v261_v33, %v237_v39 }
  0x99   :  { %v244_v49 = vshll.u32 %v911_v40, 16  ;;  %v87_v56 = vmul.u32 %v85_v46, %v82_v31  ;;  %v88_v57 = vmul.u32 %v84_v45, %v83_v37  ;;  %v86_v59 = vmul.u32 %v84_v45, %v82_v31 }
  0x9a   :  { %v108_v32 = vmul.u32 %v106_v36, %v82_v31  ;;  %v111_v58 = vmul.u32 %v107_v38, %v83_v37  ;;  %v112_v60 = vshll.u32 %v109_v50, 16  ;;  %v89_v63 = vmul.u32 %v85_v46, %v83_v37 }
  0x9b   :  { %vm921_vm10 = vc.u32 %v240_v43, %v244_v49  ;;  %v250_v62 = vadd.s32 %v244_v49, %v240_v43  ;;  %v90_v0 = vshll.u32 %v87_v56, 16  ;;  %v92_v2 = vshll.u32 %v88_v57, 16 }
  0x9c   :  { %v114_v3 = vshll.u32 %v110_v51, 16  ;;  %vm116_vm11 = vc.u32 %v108_v32, %v112_v60  ;;  %v118_v8 = vadd.s32 %v112_v60, %v108_v32  ;;  %v242_v14 = vmul.u32 %v238_v29, %v237_v39 }
  0x9d   :  { %vm94_vm12 = vc.u32 %v86_v59, %v90_v0  ;;  %v96_v9 = vadd.s32 %v90_v0, %v86_v59  ;;  %v117_v11 = vsel %vm116_vm11, 1, %v781_v1  ;;  %v113_v16 = vshrl.u32 %v109_v50, 16 }
  0x9e   :  { %v95_v15 = vsel %vm94_vm12, 1, %v781_v1  ;;  %v119_v17 = vadd.s32 %v117_v11, %v111_v58  ;;  %vm120_vm13 = vc.u32 %v118_v8, %v114_v3  ;;  %v91_v18 = vshrl.u32 %v87_v56, 16 }
  0x9f   :  { %v97_v19 = vadd.s32 %v95_v15, %v89_v63  ;;  %vm98_vm14 = vc.u32 %v96_v9, %v92_v2  ;;  %v121_v20 = vsel %vm120_vm13, 1, %v781_v1  ;;  %v115_v22 = vshrl.u32 %v110_v51, 16 }
  0xa0   :  { %v99_v21 = vsel %vm98_vm14, 1, %v781_v1  ;;  %v123_v23 = vadd.s32 %v121_v20, %v119_v17  ;;  %v246_v24 = vshll.u32 %v242_v14, 16  ;;  %v249_v26 = vsel %vm921_vm10, 1, %v781_v1 }
  0xa1   :  { %v101_v25 = vadd.s32 %v99_v21, %v97_v19  ;;  %v262_v27 = vmul.u32 %v260_v44, %v236_v28  ;;  %v264_v29 = vmul.u32 %v260_v44, %v237_v39  ;;  %v251_v31 = vadd.s32 %v249_v26, %v243_v47 }
  0xa2   :  { %v124_v30 = vadd.s32 %v123_v23, %v113_v16  ;;  %vm252_vm15 = vc.u32 %v250_v62, %v246_v24  ;;  %v266_v33 = vshll.u32 %v919_v52, 16  ;;  %v93_v34 = vshrl.u32 %v88_v57, 16 }
  0xa3   :  { %v102_v36 = vadd.s32 %v101_v25, %v91_v18  ;;  %v122_v38 = vadd.s32 %v118_v8, %v114_v3  ;;  %v253_v37 = vsel %vm252_vm15, 1, %v781_v1  ;;  %v245_v45 = vshrl.u32 %v911_v40, 16 }
  0xa4   :  { %v125_v43 = vadd.s32 %v124_v30, %v115_v22  ;;  %v255_v46 = vadd.s32 %v253_v37, %v251_v31  ;;  %vm270_vm0 = vc.u32 %v262_v27, %v266_v33  ;;  %v268_v50 = vshll.u32 %v264_v29, 16 }
  0xa5   :  { %v103_v49 = vadd.s32 %v102_v36, %v93_v34  ;;  %v271_v28 = vsel %vm270_vm0, 1, %v781_v1  ;;  %v272_v39 = vadd.s32 %v266_v33, %v262_v27  ;;  %v224_v56 = vsel %vm222_vm7, %v865_v7, 2102212464 }
  0xa6   :  { %v129_v44 = vadd.s32 1, %v125_v43  ;;  %v256_v47 = vadd.s32 %v255_v46, %v245_v45  ;;  %v273_v51 = vadd.s32 %v271_v28, %v265_v53  ;;  %v126_v57 = vmul.u32 %v836_v42, %v915_v41 }
  0xa7   :  { %vm128_vm1 = vc.u32 %v103_v49, %v122_v38  ;;  %vm274_vm2 = vc.u32 %v272_v39, %v268_v50  ;;  %v203_v40 = vshrl.u32 %v786_v35, %v848_v55  ;;  %v247_v32 = vshrl.u32 %v242_v14, 16 }
  0xa8   :  { %v130_v59 = vsel %vm128_vm1, %v129_v44, %v125_v43  ;;  %v275_v58 = vsel %vm274_vm2, 1, %v781_v1  ;;  %v267_v61 = vshrl.u32 %v919_v52, 16  ;;  %v225_v42 = vsel %vm221_vm9, %v863_v6, %v224_v56 }
  0xa9   :  { %v131_v60 = vadd.s32 %v130_v59, %v126_v57  ;;  %v277_v53 = vadd.s32 %v275_v58, %v273_v51  ;;  %v223_v7 = vsel %vm219_vm6, %v203_v40, %v861_v4  ;;  %v257_v41 = vadd.s32 %v256_v47, %v247_v32 }
  0xaa   :  { %v269_v63 = vshrl.u32 %v264_v29, 16  ;;  %v276_v55 = vadd.s32 %v272_v39, %v268_v50  ;;  %v226_v1 = vsel %vm220_vm8, %v223_v7, %v225_v42  ;;  %v127_v21 = vadd.s32 %v122_v38, %v103_v49 }
  0xab   :  { %v132_v62 = vadd.s32 536870912, %v131_v60  ;;  %v278_v35 = vadd.s32 %v277_v53, %v267_v61  ;;  %v280_v8 = vmul.u32 %v839_v48, %v226_v1  ;;  %vm35_vm8 = vcmp.lt.s32.totalorder %v821_v5, 0 }
  0xac   :  { %vm282_vm3 = vc.u32 %v257_v41, %v276_v55  ;;  %v281_v46 = vadd.s32 %v276_v55, %v257_v41  ;;  %vm34_vm9 = vcmp.le.f32.partialorder %v33_v10, 0.7853982  ;;  %vm189_vm10 = vcmp.lt.s32.totalorder %v825_v12, 0 }
  0xad   :  { %v133_v0 = vshrl.u32 %v132_v62, 30  ;;  %v279_v2 = vadd.s32 %v278_v35, %v269_v63  ;;  %vm964_vm11 = vcmp.le.f32.partialorder %v187_v13, 0.7853982  ;;  %vm176_vm2 = vweird.f32 %v821_v5 }
  0xaf   :  { %v134_v52 = vshll.u32 %v133_v0, 30  ;;  %v283_v3 = vadd.s32 1, %v279_v2  ;;  %v157_v47 = vsub.s32 4, %v133_v0 }
  0xb1   :  { %v135_v4 = vsub.s32 %v131_v60, %v134_v52  ;;  %v284_v9 = vsel %vm282_vm3, %v283_v3, %v279_v2  ;;  %v158_v58 = vsel %vm35_vm8, %v157_v47, %v133_v0 }
  0xb2   :  { %v285_v11 = vadd.s32 %v284_v9, %v280_v8  ;;  %v160_v42 = vsel %vm34_vm9, 0, %v158_v58  ;;  %v740_v58 = vld [vmem:[%s1002_s0] sm:$0xff]   ;;  %s789_s0 = smov [#allocation2]  }
  0xb3   :  { %vm136_vm4 = vcmp.lt.s32.totalorder %v135_v4, 0  ;;  %v137_v6 = vsub.s32 0, %v135_v4  ;;  %v485_v10 = vadd.s32 3, %v160_v42  ;;  %s713_s19 = sshll.u32 %s789_s0, 4  ;;  %s714_s19 = int_to_ptr.vmem [resolvable:$true] %s713_s19 }
  0xb4   :  { %v286_v14 = vadd.s32 536870912, %v285_v11 }
  0xb5   :  { %v138_v15 = vsel %vm136_vm4, %v137_v6, %v135_v4 }
  0xb6   :  { %v139_v16 = vclz %v138_v15  ;;  %v954_v17 = vshrl.u32 %v286_v14, 30  ;;  %v486_v14 = vand.u32 3, %v485_v10  ;;  %v177_v15 = vand.u32 3, %v160_v42 }
  0xb8   :  { %v728_v18 = vadd.s32 4294967294, %v139_v16  ;;  %v288_v54 = vshll.u32 %v954_v17, 30  ;;  %v311_v8 = vsub.s32 4, %v954_v17  ;;  %vm178_vm12 = vcmp.lt.s32.totalorder %v177_v15, 2 }
  0xb9   :  { %vm179_vm13 = vcmp.eq.s32.totalorder %v177_v15, 0  ;;  %vm182_vm14 = vcmp.eq.s32.totalorder %v177_v15, 2  ;;  %vm487_vm15 = vcmp.lt.s32.totalorder %v486_v14, 2  ;;  %vm491_vm0 = vcmp.eq.s32.totalorder %v486_v14, 2 }
  0xba   :  { %vm729_vm5 = vcmp.lt.s32.totalorder %v728_v18, 0  ;;  %v289_v19 = vsub.s32 %v285_v11, %v288_v54  ;;  %vm488_vm1 = vcmp.eq.s32.totalorder %v486_v14, 0 }
  0xbb   :  { %v142_v20 = vsel %vm729_vm5, 0, %v728_v18 }
  0xbc   :  { %v143_v22 = vsub.s32 32, %v142_v20  ;;  %v147_v23 = vsub.s32 4294967266, %v142_v20  ;;  %vm290_vm6 = vcmp.lt.s32.totalorder %v289_v19, 0  ;;  %v291_v48 = vsub.s32 0, %v289_v19 }
  0xbd   :  { %v144_v24 = vshll.u32 %v135_v4, %v142_v20 }
  0xbe   :  { %v145_v25 = vshrl.u32 %v127_v21, %v143_v22  ;;  %v148_v26 = vadd.s32 127, %v147_v23  ;;  %v292_v27 = vsel %vm290_vm6, %v291_v48, %v289_v19 }
  0xbf   :  { %v293_v31 = vclz %v292_v27 }
  0xc0   :  { %v146_v29 = vor.u32 %v145_v25, %v144_v24  ;;  %v149_v30 = vshll.u32 %v148_v26, 23 }
  0xc1   :  { %v731_v34 = vadd.s32 4294967294, %v293_v31 }
  0xc2   :  { %v150_v33 = vor.u32 4788187, %v149_v30  ;;  %v153_v37 = vcvt.s32.f32 %v146_v29 }
  0xc3   :  { %vm732_vm7 = vcmp.lt.s32.totalorder %v731_v34, 0 }
  0xc4   :  { %v151_v36 = vand.u32 2147483647, %v150_v33  ;;  %v296_v43 = vsel %vm732_vm7, 0, %v731_v34 }
  0xc5   :  { %v297_v38 = vsub.s32 32, %v296_v43  ;;  %v301_v49 = vsub.s32 4294967266, %v296_v43  ;;  %v298_v28 = vshll.u32 %v289_v19, %v296_v43  ;;  %v312_v19 = vsel %vm189_vm10, %v311_v8, %v954_v17 }
  0xc6   :  { %v154_v45 = vmul.f32 %v153_v37, %v151_v36  ;;  %v314_v26 = vsel %vm964_vm11, 0, %v312_v19 }
  0xc7   :  { %v299_v39 = vshrl.u32 %v281_v46, %v297_v38  ;;  %v302_v44 = vadd.s32 127, %v301_v49  ;;  %v640_v46 = vadd.s32 3, %v314_v26 }
  0xc8   :  { %v155_v50 = vxor.u32 2147483648, %v154_v45 }
  0xc9   :  { %v300_v56 = vor.u32 %v299_v39, %v298_v28  ;;  %v303_v57 = vshll.u32 %v302_v44, 23  ;;  %v331_v28 = vand.u32 3, %v314_v26  ;;  %v641_v39 = vand.u32 3, %v640_v46 }
  0xca   :  { %v156_v51 = vsel %vm35_vm8, %v155_v50, %v154_v45 }
  0xcb   :  { %v159_v40 = vsel %vm34_vm9, %v821_v5, %v156_v51  ;;  %v304_v32 = vor.u32 4788187, %v303_v57  ;;  %v307_v7 = vcvt.s32.f32 %v300_v56  ;;  %vm332_vm3 = vcmp.lt.s32.totalorder %v331_v28, 2 }
  0xcc   :  { %v161_v59 = vmul.f32 %v159_v40, %v159_v40  ;;  %vm333_vm4 = vcmp.eq.s32.totalorder %v331_v28, 0  ;;  %vm642_vm5 = vcmp.lt.s32.totalorder %v641_v39, 2  ;;  %vm643_vm6 = vcmp.eq.s32.totalorder %v641_v39, 0 }
  0xcd   :  { %v305_v53 = vand.u32 2147483647, %v304_v32  ;;  %vm646_vm7 = vcmp.eq.s32.totalorder %v641_v39, 2  ;;  %vm336_vm8 = vcmp.eq.s32.totalorder %v331_v28, 2  ;;  %vm330_vm9 = vweird.f32 %v825_v12 }
  0xce   :  { %v162_v60 = vmul.f32 -0.001358992, %v161_v59  ;;  %v169_v61 = vmul.f32 -0.00019511016, %v161_v59 }
  0xcf   :  { %v308_v63 = vmul.f32 %v307_v7, %v305_v53  ;;  %v741_v53 = vunpack.c.l.bf16 %v740_v58 }
  0xd0   :  { %v163_v41 = vadd.f32 0.041655596, %v162_v60  ;;  %v170_v62 = vadd.f32 0.008332121, %v169_v61 }
  0xd1   :  { %v309_v1 = vxor.u32 2147483648, %v308_v63 }
  0xd2   :  { %v164_v35 = vmul.f32 %v163_v41, %v161_v59  ;;  %v171_v55 = vmul.f32 %v170_v62, %v161_v59 }
  0xd3   :  { %v310_v3 = vsel %vm189_vm10, %v309_v1, %v308_v63  ;;  %vm679_vm10 = vcmask 519168  }
  0xd4   :  { %v165_v2 = vadd.f32 -0.4999988, %v164_v35  ;;  %v172_v52 = vadd.f32 -0.16666654, %v171_v55  ;;  %v313_v4 = vsel %vm964_vm11, %v825_v12, %v310_v3  ;;  %v742_v12 = vunpack.c.h.bf16 %v740_v58 }
  0xd5   :  { %v315_v6 = vmul.f32 %v313_v4, %v313_v4  ;;  %vm706_vm11 = vcmask 1043968  }
  0xd6   :  { %v166_v9 = vmul.f32 %v165_v2, %v161_v59  ;;  %v173_v11 = vmul.f32 %v172_v52, %v161_v59 }
  0xd7   :  { %v316_v13 = vmul.f32 -0.001358992, %v315_v6  ;;  %v323_v54 = vmul.f32 -0.00019511016, %v315_v6 }
  0xd8   :  { %v167_v16 = vadd.f32 1.0, %v166_v9  ;;  %v174_v18 = vadd.f32 1.0, %v173_v11 }
  0xd9   :  { %v317_v22 = vadd.f32 0.041655596, %v316_v13  ;;  %v324_v23 = vadd.f32 0.008332121, %v323_v54 }
  0xda   :  { %v175_v20 = vmul.f32 %v174_v18, %v159_v40  ;;  %v183_v21 = vxor.u32 2147483648, %v167_v16 }
  0xdb   :  { %v318_v24 = vmul.f32 %v317_v22, %v315_v6  ;;  %v325_v27 = vmul.f32 %v324_v23, %v315_v6 }
  0xdc   :  { %v180_v48 = vxor.u32 2147483648, %v175_v20  ;;  %v493_v25 = vsel %vm491_vm0, %v183_v21, %v175_v20  ;;  %v184_v17 = vsel %vm182_vm14, %v183_v21, %v175_v20 }
  0xdd   :  { %v319_v31 = vadd.f32 -0.4999988, %v318_v24  ;;  %v326_v36 = vadd.f32 -0.16666654, %v325_v27 }
  0xde   :  { %v490_v29 = vsel %vm488_vm1, %v167_v16, %v180_v48  ;;  %v181_v30 = vsel %vm179_vm13, %v167_v16, %v180_v48 }
  0xdf   :  { %v494_v33 = vsel %vm487_vm15, %v490_v29, %v493_v25  ;;  %v185_v34 = vsel %vm178_vm12, %v181_v30, %v184_v17  ;;  %v320_v45 = vmul.f32 %v319_v31, %v315_v6  ;;  %v327_v38 = vmul.f32 %v326_v36, %v315_v6 }
  0xe0   :  { %v495_v37 = vsel %vm176_vm2, nan, %v494_v33  ;;  %v186_v43 = vsel %vm176_vm2, nan, %v185_v34 }
  0xe1   :  { %659 = vrot.lane.b32.xlu1 %v495_v37, %s788_s1  ;;  %684 = vrot.lane.b32.xlu2 %v186_v43, %s788_s1  ;;  %v321_v49 = vadd.f32 1.0, %v320_v45  ;;  %v328_v50 = vadd.f32 1.0, %v327_v38  ;;  %v692_v7 = vmul.f32 %v741_v53, %v495_v37  ;;  %v655_v52 = vmul.f32 %v741_v53, %v186_v43 }
  0xe3   :  { %v329_v44 = vmul.f32 %v328_v50, %v313_v4  ;;  %v337_v5 = vxor.u32 2147483648, %v321_v49 }
  0xe5   :  { %v334_v47 = vxor.u32 2147483648, %v329_v44  ;;  %v648_v56 = vsel %vm646_vm7, %v337_v5, %v329_v44  ;;  %v338_v40 = vsel %vm336_vm8, %v337_v5, %v329_v44 }
  0xe7   :  { %v645_v51 = vsel %vm643_vm6, %v321_v49, %v334_v47  ;;  %v335_v57 = vsel %vm333_vm4, %v321_v49, %v334_v47 }
  0xe8   :  { %v649_v59 = vsel %vm642_vm5, %v645_v51, %v648_v56  ;;  %v339_v32 = vsel %vm332_vm3, %v335_v57, %v338_v40 }
  0xe9   :  { %v650_v60 = vsel %vm330_vm9, nan, %v649_v59  ;;  %v340_v61 = vsel %vm330_vm9, nan, %v339_v32 }
  0xea   :  { %661 = vrot.lane.b32.xlu1 %v650_v60, %s788_s1  ;;  %686 = vrot.lane.b32.xlu2 %v340_v61, %s788_s1  ;;  %v693_v62 = vmul.f32 %v742_v12, %v650_v60  ;;  %v656_v15 = vmul.f32 %v742_v12, %v340_v61 }
  0xf2   :  { %696 = vrot.lane.b32.xlu2 %v692_v7, %s788_s1 }
 0x13b   :  { %v685_v55 = vpop.permute.xlu2 %684 }
 0x13c   :  { %v690_v2 = vmul.f32 %v741_v53, %v685_v55 }
 0x144   :  { %v687_v1 = vpop.permute.xlu2 %686 }
 0x145   :  { %v691_v11 = vmul.f32 %v742_v12, %v687_v1 }
 0x14c   :  { %v697_v10 = vpop.permute.xlu2 %696 }
 0x14d   :  { %v702_v0 = vadd.f32 %v697_v10, %v690_v2 }
 0x14f   :  { %v704_v9 = vpack.c.bf16 %v702_v0, %v702_v0 }
 0x153   :  { %v660_v42 = vpop.permute.xlu1 %659 }
 0x154   :  { %v665_v41 = vmul.f32 %v741_v53, %v660_v42 }
 0x156   :  { %669 = vrot.lane.b32.xlu0 %v665_v41, %s788_s1 }
 0x15c   :  { %v662_v63 = vpop.permute.xlu1 %661 }
 0x15d   :  { %v666_v35 = vmul.f32 %v742_v12, %v662_v63 }
 0x15e   :  { %698 = vrot.lane.b32.xlu0 %v693_v62, %s788_s1 }
 0x15f   :  { %671 = vrot.lane.b32.xlu1 %v666_v35, %s788_s1 }
 0x1c8   :  { %v670_v3 = vpop.permute.xlu0 %669 }
 0x1c9   :  { %v675_v8 = vsub.f32 %v655_v52, %v670_v3 }
 0x1cb   :  { %v677_v4 = vpack.c.bf16 %v675_v8, %v675_v8 }
 0x1cd   :  { %680 = vst.msk [vmem:[#allocation2] sm:$0xf] %vm679_vm10, %v677_v4 }
 0x1ce   :  { %707 = vst.msk [vmem:[#allocation2] sm:$0xf] %vm706_vm11, %v704_v9 }
 0x1d0   :  { %v699_v6 = vpop.permute.xlu0 %698 }
 0x1d1   :  { %v703_v14 = vadd.f32 %v699_v6, %v691_v11  ;;  %v672_v16 = vpop.permute.xlu1 %671 }
 0x1d2   :  { %v676_v18 = vsub.f32 %v656_v15, %v672_v16 }
 0x1d3   :  { %v705_v13 = vpack.c.bf16 %v703_v14, %v703_v14 }
 0x1d4   :  { %v678_v54 = vpack.c.bf16 %v676_v18, %v676_v18 }
 0x1d6   :  { %681 = vst.msk [vmem:[#allocation2 + $0x4] sm:$0xf] %vm679_vm10, %v678_v54 }
 0x1d7   :  { %708 = vst.msk [vmem:[#allocation2 + $0x4] sm:$0xf] %vm706_vm11, %v705_v13 }
 0x1d8   :  { %721 = dma.vmem_to_hbm [thread:$0]  %s714_s19, 128, %s716_s22, [#allocation3], %s788_s1, %s788_s1, %s790_s23  }
 0x1d9   :  { %779 = dma.done.wait [#allocation3], 128  }
 0x1da   :  { %780 = vsyncadd [#allocation3], 4294967168 }
 0x1db   :  { %726 = vsyncpa [#allocation3], 1 }

</bundles_post_ra>
